<compile_context>
chip_gen: v7x
topology: tpu7x:2x2x1
jax: 0.10.0
libtpu: 0.0.40
codegen_flags: <defaults>
</compile_context>

<pallas_src>
import functools
import numpy as np
import jax
import jax.numpy as jnp
from jax import lax
from jax.experimental import pallas as pl
from jax.experimental.pallas import tpu as pltpu

LANE = 128
_DEF_VMEM_TILE_BUDGET = 12 * 1024 * 1024   # tile budget incl. double-buffering (fits v5e 16 MiB scoped)
_VMEM_LIMIT_BYTES = 32 * 1024 * 1024       # explicit scoped-VMEM limit, safe on v5e/v6e/v7x


# ------------------------------ small helpers ------------------------------ #
def _round_up(n, mult):
    return ((n + mult - 1) // mult) * mult


def _pad_lanes(a, m_pad):
    pad = m_pad - a.shape[-1]
    if pad == 0:
        return a
    return jnp.pad(a, [(0, 0)] * (a.ndim - 1) + [(0, pad)])


def _choose_lane_tile(bytes_per_lane, m_pad, budget=_DEF_VMEM_TILE_BUDGET):
    """Largest multiple-of-128 lane tile whose (double-buffered) VMEM tiles fit `budget`."""
    tm = max(LANE, (budget // max(bytes_per_lane, 1)) // LANE * LANE)
    tm = min(tm, m_pad)
    while m_pad % tm:          # m_pad is a multiple of 128 -> terminates at 128
        tm -= LANE
    return tm


# -------------------- spectral contraction Pallas kernel ------------------- #
def _spectral_mul_kernel(xr_ref, xi_ref, wr_ref, wi_ref, or_ref, oi_ref):
    """Per-mode complex channel contraction for one (weights-half, M-tile) grid step.

    xr/xi : (Cin, B, TM)    real / imag Fourier modes of the input
    wr/wi : (Cin, Cout, TM) real / imag spectral weights
    or/oi : (B, Cout, TM)   real / imag output modes
    """
    cin = xr_ref.shape[0]

    def body(i, carry):
        acc_r, acc_i = carry
        xr_i = xr_ref[i][:, None, :]      # (B, 1, TM)
        xi_i = xi_ref[i][:, None, :]
        wr_i = wr_ref[i][None, :, :]      # (1, Cout, TM)
        wi_i = wi_ref[i][None, :, :]
        # (a + ib) * (c + id) = (ac - bd) + i(ad + bc)
        acc_r = acc_r + (xr_i * wr_i - xi_i * wi_i)
        acc_i = acc_i + (xr_i * wi_i + xi_i * wr_i)
        return acc_r, acc_i

    # TODO(synk): for Cin/Cout >= ~128 switch this VPU rank-1 accumulation to a per-tile
    # MXU dot_general (M as batch dim); below that the MXU would run at <1% utilization.
    unroll = cin if cin <= 8 else 8
    acc_r, acc_i = lax.fori_loop(
        0, cin, body,
        (jnp.zeros(or_ref.shape, jnp.float32),
         jnp.zeros(oi_ref.shape, jnp.float32)),
        unroll=unroll)
    or_ref[...] = acc_r
    oi_ref[...] = acc_i


def _spectral_contract(x_modes, weights):
    """einsum('hbixy,hioxy->hboxy') for complex inputs, fused over the h(=2) halves."""
    H2, B, Ci, m1, m2 = x_modes.shape
    Co = weights.shape[2]
    M = m1 * m2
    M_pad = _round_up(M, LANE)

    # (2, Cin, B, M_pad): Cin leading so the kernel indexes one input channel per
    # loop step; lane dim zero-padded to a multiple of 128 (lane-dense loads/stores).
    # (Channel counts >= 8 are naturally sublane-aligned; tiny demo channels are not padded.)
    x_flat = x_modes.reshape(H2, B, Ci, M).transpose(0, 2, 1, 3)
    w_flat = weights.reshape(H2, Ci, Co, M)

    xr = _pad_lanes(jnp.real(x_flat).astype(jnp.float32), M_pad)
    xi = _pad_lanes(jnp.imag(x_flat).astype(jnp.float32), M_pad)
    wr = _pad_lanes(jnp.real(w_flat).astype(jnp.float32), M_pad)
    wi = _pad_lanes(jnp.imag(w_flat).astype(jnp.float32), M_pad)

    # f32 * (re+im) * double-buffer * (x tile + w tile + out tiles) per lane column
    bytes_per_lane = 4 * 2 * 2 * (Ci * B + Ci * Co + B * Co)
    tm = _choose_lane_tile(bytes_per_lane, M_pad)

    grid = (H2, M_pad // tm)
    x_spec = pl.BlockSpec((pl.Squeezed(), Ci, B, tm), lambda h, m: (h, 0, 0, m))
    w_spec = pl.BlockSpec((pl.Squeezed(), Ci, Co, tm), lambda h, m: (h, 0, 0, m))
    o_spec = pl.BlockSpec((pl.Squeezed(), B, Co, tm), lambda h, m: (h, 0, 0, m))

    flops = 8 * H2 * B * Ci * Co * M_pad                       # 4 mul + 4 add per complex MAC
    bytes_accessed = 4 * 2 * H2 * M_pad * (B * Ci + Ci * Co + B * Co)

    out_r, out_i = pl.pallas_call(
        _spectral_mul_kernel,
        out_shape=(jax.ShapeDtypeStruct((H2, B, Co, M_pad), jnp.float32),
                   jax.ShapeDtypeStruct((H2, B, Co, M_pad), jnp.float32)),
        grid_spec=pltpu.PrefetchScalarGridSpec(
            num_scalar_prefetch=0,
            grid=grid,
            in_specs=[x_spec, x_spec, w_spec, w_spec],
            out_specs=[o_spec, o_spec]),
        compiler_params=pltpu.CompilerParams(
            dimension_semantics=("parallel", "parallel"),
            vmem_limit_bytes=_VMEM_LIMIT_BYTES),
        cost_estimate=pl.CostEstimate(flops=flops, transcendentals=0,
                                      bytes_accessed=bytes_accessed),
    )(xr, xi, wr, wi)

    out = lax.complex(out_r[..., :M], out_i[..., :M])
    return out.reshape(H2, B, Co, m1, m2)


# ----------------------- pointwise 1x1 conv Pallas kernel ------------------ #
def _pointwise_conv_kernel(x_ref, w_ref, b_ref, o_ref):
    """1x1 conv over channels for one (batch, spatial-tile) grid step.

    x: (Cin, TN), w: (Cout, Cin), b: (Cout, 1) -> o: (Cout, TN)
    """
    x = x_ref[...]
    w = w_ref[...]
    cin = x.shape[0]
    acc = jnp.broadcast_to(b_ref[...], o_ref.shape).astype(jnp.float32)   # hoisted broadcast
    # TODO(synk): for Cin/Cout >= ~128 use jnp.dot((Cout,Cin) @ (Cin,TN)) on the MXU.
    for i in range(cin):
        acc = acc + w[:, i:i + 1] * x[i:i + 1, :]
    o_ref[...] = acc


def pointwise_conv1x1_pallas(x, weight, bias):
    """PyTorch nn.Conv2d(Cin, Cout, 1): x (B,Cin,H,W) -> (B,Cout,H,W)."""
    B, Ci, H, W = x.shape
    Co = weight.shape[0]
    HW = H * W
    HW_pad = _round_up(HW, LANE)

    x_flat = _pad_lanes(x.reshape(B, Ci, HW).astype(jnp.float32), HW_pad)
    w2d = weight.reshape(Co, Ci).astype(jnp.float32)
    b2d = bias.reshape(Co, 1).astype(jnp.float32)

    bytes_per_lane = 4 * 2 * (Ci + Co)          # double-buffered x + out tiles per lane column
    tn = _choose_lane_tile(bytes_per_lane, HW_pad)

    grid = (B, HW_pad // tn)
    out = pl.pallas_call(
        _pointwise_conv_kernel,
        out_shape=jax.ShapeDtypeStruct((B, Co, HW_pad), jnp.float32),
        grid_spec=pltpu.PrefetchScalarGridSpec(
            num_scalar_prefetch=0,
            grid=grid,
            in_specs=[pl.BlockSpec((pl.Squeezed(), Ci, tn), lambda b, n: (b, 0, n)),
                      pl.BlockSpec((Co, Ci), lambda b, n: (0, 0)),
                      pl.BlockSpec((Co, 1), lambda b, n: (0, 0))],
            out_specs=pl.BlockSpec((pl.Squeezed(), Co, tn), lambda b, n: (b, 0, n))),
        compiler_params=pltpu.CompilerParams(
            dimension_semantics=("parallel", "parallel"),
            vmem_limit_bytes=_VMEM_LIMIT_BYTES),
    )(x_flat, w2d, b2d)
    return out[:, :, :HW].reshape(B, Co, H, W)


# --------------------------- bicubic resize (JAX) --------------------------- #
def _cubic_weight(x, a=-0.75):
    x = np.abs(x)
    x2, x3 = x * x, x * x * x
    return np.where(x <= 1.0, (a + 2.0) * x3 - (a + 3.0) * x2 + 1.0,
                    np.where(x < 2.0, a * x3 - 5.0 * a * x2 + 8.0 * a * x - 4.0 * a, 0.0))


def _bicubic_matrix_align_corners(n_in, n_out):
    if n_in == n_out:
        return np.eye(n_out, dtype=np.float32)
    if n_out == 1 or n_in == 1:
        m = np.zeros((n_out, n_in), np.float32)
        m[:, 0] = 1.0
        return m
    scale = (n_in - 1) / (n_out - 1)
    src = np.arange(n_out, dtype=np.float64) * scale
    base = np.floor(src).astype(np.int64)
    frac = src - base
    taps = np.arange(-1, 3)
    idx = np.clip(base[:, None] + taps[None, :], 0, n_in - 1)
    wts = _cubic_weight(frac[:, None] - taps[None, :]).astype(np.float32)
    mat = np.zeros((n_out, n_in), np.float32)
    rows = np.repeat(np.arange(n_out), 4)
    np.add.at(mat, (rows, idx.reshape(-1)), wts.reshape(-1))
    return mat


def _bicubic_resize_align_corners(x, d1, d2):
    """F.interpolate(mode='bicubic', align_corners=True). Identity at matching size."""
    _, _, H, W = x.shape
    if (H, W) == (d1, d2):
        return x
    # TODO(synk): PyTorch's antialias=True low-pass for *downsampling* is not replicated;
    # this is plain align_corners bicubic (exact for identity, matches AA interior on upsampling).
    a1 = jnp.asarray(_bicubic_matrix_align_corners(H, d1))
    a2 = jnp.asarray(_bicubic_matrix_align_corners(W, d2))
    y = jnp.einsum("oh,bchw->bcow", a1, x)
    return jnp.einsum("pw,bcow->bcop", a2, y)


# ------------------------------- module ports ------------------------------ #
def init_spectral_conv2d_uno(key, in_codim, out_codim, dim1, dim2, modes1=None, modes2=None):
    in_codim, out_codim = int(in_codim), int(out_codim)
    if modes1 is None:
        modes1, modes2 = dim1 // 2 - 1, dim2 // 2
    scale = (1.0 / (2.0 * in_codim)) ** 0.5
    k1, k2, k3, k4 = jax.random.split(key, 4)
    shape = (in_codim, out_codim, int(modes1), int(modes2))
    w1 = scale * lax.complex(jax.random.normal(k1, shape, jnp.float32),
                             jax.random.normal(k2, shape, jnp.float32))
    w2 = scale * lax.complex(jax.random.normal(k3, shape, jnp.float32),
                             jax.random.normal(k4, shape, jnp.float32))
    params = {"weights1": w1.astype(jnp.complex64), "weights2": w2.astype(jnp.complex64)}
    cfg = dict(in_channels=in_codim, out_channels=out_codim,
               dim1=int(dim1), dim2=int(dim2), modes1=int(modes1), modes2=int(modes2))
    return params, cfg


def spectral_conv2d_uno_forward(params, cfg, x, dim1=None, dim2=None):
    d1 = cfg["dim1"] if dim1 is None else int(dim1)
    d2 = cfg["dim2"] if dim2 is None else int(dim2)
    m1, m2 = cfg["modes1"], cfg["modes2"]
    B, Co = x.shape[0], cfg["out_channels"]

    x_ft = jnp.fft.rfft2(x, norm="forward")                   # (B, Ci, H, W//2+1)

    # fuse the weights1 / weights2 contractions into a single pallas_call
    x_modes = jnp.stack([x_ft[:, :, :m1, :m2], x_ft[:, :, -m1:, :m2]], axis=0)
    w_modes = jnp.stack([params["weights1"], params["weights2"]], axis=0)
    out_modes = _spectral_contract(x_modes, w_modes)           # (2, B, Co, m1, m2)

    out_ft = jnp.zeros((B, Co, d1, d2 // 2 + 1), dtype=jnp.complex64)
    out_ft = out_ft.at[:, :, :m1, :m2].set(out_modes[0])
    out_ft = out_ft.at[:, :, d1 - m1:, :m2].set(out_modes[1])
    return jnp.fft.irfft2(out_ft, s=(d1, d2), norm="forward")


def init_pointwise_op_2d(key, in_codim, out_codim, dim1, dim2):
    in_codim, out_codim = int(in_codim), int(out_codim)
    kw, kb = jax.random.split(key)
    bound = 1.0 / np.sqrt(in_codim)                            # PyTorch Conv2d default bound
    weight = jax.random.uniform(kw, (out_codim, in_codim, 1, 1), jnp.float32, -bound, bound)
    bias = jax.random.uniform(kb, (out_codim,), jnp.float32, -bound, bound)
    return {"weight": weight, "bias": bias}, dict(dim1=int(dim1), dim2=int(dim2))


def pointwise_op_2d_forward(params, cfg, x, dim1=None, dim2=None):
    d1 = cfg["dim1"] if dim1 is None else int(dim1)
    d2 = cfg["dim2"] if dim2 is None else int(dim2)
    y = pointwise_conv1x1_pallas(x, params["weight"], params["bias"])
    return _bicubic_resize_align_corners(y, d1, d2)


def init_operator_block_2d(key, in_codim, out_codim, dim1, dim2, modes1, modes2,
                           normalize=False, non_lin=True):
    kc, kw = jax.random.split(key)
    conv_p, conv_cfg = init_spectral_conv2d_uno(kc, in_codim, out_codim, dim1, dim2, modes1, modes2)
    w_p, w_cfg = init_pointwise_op_2d(kw, in_codim, out_codim, dim1, dim2)
    params = {"conv": conv_p, "w": w_p}
    if normalize:
        params["norm"] = {"gamma": jnp.ones((int(out_codim),), jnp.float32),
                          "beta": jnp.zeros((int(out_codim),), jnp.float32)}
    cfg = dict(conv=conv_cfg, w=w_cfg, normalize=bool(normalize), non_lin=bool(non_lin))
    return params, cfg


def _maybe_norm_gelu(params, cfg, out):
    if cfg["normalize"]:
        g, b = params["norm"]["gamma"], params["norm"]["beta"]
        mean = out.mean(axis=(2, 3), keepdims=True)
        var = out.var(axis=(2, 3), keepdims=True)
        out = (out - mean) * lax.rsqrt(var + 1e-5)
        out = out * g[None, :, None, None] + b[None, :, None, None]
    if cfg["non_lin"]:
        out = jax.nn.gelu(out, approximate=False)              # exact erf GELU == F.gelu default
    return out


def operator_block_2d_forward(params, cfg, x, dim1=None, dim2=None):
    x1 = spectral_conv2d_uno_forward(params["conv"], cfg["conv"], x, dim1, dim2)
    x2 = pointwise_op_2d_forward(params["w"], cfg["w"], x, dim1, dim2)
    return _maybe_norm_gelu(params, cfg, x1 + x2)


# ------------------------------ pure-JAX reference ------------------------- #
def _ref_forward(params, cfg, x, dim1=None, dim2=None):
    ccfg = cfg["conv"]
    d1 = ccfg["dim1"] if dim1 is None else int(dim1)
    d2 = ccfg["dim2"] if dim2 is None else int(dim2)
    m1, m2 = ccfg["modes1"], ccfg["modes2"]
    x_ft = jnp.fft.rfft2(x, norm="forward")
    o1 = jnp.einsum("bixy,ioxy->boxy", x_ft[:, :, :m1, :m2], params["conv"]["weights1"])
    o2 = jnp.einsum("bixy,ioxy->boxy", x_ft[:, :, -m1:, :m2], params["conv"]["weights2"])
    out_ft = jnp.zeros((x.shape[0], ccfg["out_channels"], d1, d2 // 2 + 1), jnp.complex64)
    out_ft = out_ft.at[:, :, :m1, :m2].set(o1)
    out_ft = out_ft.at[:, :, d1 - m1:, :m2].set(o2)
    x1 = jnp.fft.irfft2(out_ft, s=(d1, d2), norm="forward")
    w = params["w"]["weight"].reshape(params["w"]["weight"].shape[0], -1)
    x2 = jnp.einsum("oi,bihw->bohw", w, x) + params["w"]["bias"][None, :, None, None]
    x2 = _bicubic_resize_align_corners(x2, d1, d2)
    return _maybe_norm_gelu(params, cfg, x1 + x2)


# ----------------------------------- demo ----------------------------------- #
if __name__ == "__main__":
    key = jax.random.PRNGKey(0)
    k_param, k_x = jax.random.split(key)

    B, Cin, Cout, D1, D2 = 2, 4, 4, 16, 16
    modes1, modes2 = D1 // 2 - 1, D2 // 2          # 7, 8 -> M = 56 (lane-padded to 128)

    params, cfg = init_operator_block_2d(k_param, Cin, Cout, D1, D2, modes1, modes2,
                                         normalize=False, non_lin=True)
    x = jax.random.normal(k_x, (B, Cin, D1, D2), dtype=jnp.float32)

    @jax.jit
    def fwd(p, xx):
        return operator_block_2d_forward(p, cfg, xx)

    y = jax.block_until_ready(fwd(params, x))
    assert y.shape == (B, Cout, D1, D2) and y.dtype == jnp.float32

    y_ref = jax.block_until_ready(_ref_forward(params, cfg, x))
    np.testing.assert_allclose(np.asarray(y), np.asarray(y_ref), rtol=1e-4, atol=1e-5)

    print("KERNEL_OK")
</pallas_src>

<mosaic_0001>
module attributes {stable_mosaic.version = 11 : i64} {
  func.func @_spectral_mul_kernel(%arg0: i32, %arg1: i32, %arg2: memref<1x4x2x128xf32, #tpu.memory_space<vmem>>, %arg3: memref<1x4x2x128xf32, #tpu.memory_space<vmem>>, %arg4: memref<1x4x4x128xf32, #tpu.memory_space<vmem>>, %arg5: memref<1x4x4x128xf32, #tpu.memory_space<vmem>>, %arg6: memref<1x2x4x128xf32, #tpu.memory_space<vmem>>, %arg7: memref<1x2x4x128xf32, #tpu.memory_space<vmem>>) attributes {dimension_semantics = [#tpu.dimension_semantics<parallel>, #tpu.dimension_semantics<parallel>], iteration_bounds = array<i64: 2, 1>, scalar_prefetch = 0 : i64, scratch_operands = 0 : i64, tpu.core_type = #tpu.core_type<tc>, window_params = [{transform_indices = @transform_0, window_bounds = array<i64: 1, 4, 2, 128>}, {transform_indices = @transform_1, window_bounds = array<i64: 1, 4, 2, 128>}, {transform_indices = @transform_2, window_bounds = array<i64: 1, 4, 4, 128>}, {transform_indices = @transform_3, window_bounds = array<i64: 1, 4, 4, 128>}, {transform_indices = @transform_4, window_bounds = array<i64: 1, 2, 4, 128>}, {transform_indices = @transform_5, window_bounds = array<i64: 1, 2, 4, 128>}]} {
    %cst = arith.constant 0.000000e+00 : f32
    %0 = vector.broadcast %cst : f32 to vector<2x4x128xf32>
    %cst_0 = arith.constant 0.000000e+00 : f32
    %1 = vector.broadcast %cst_0 : f32 to vector<2x4x128xf32>
    %c0_i32 = arith.constant 0 : i32
    %c0 = arith.constant 0 : index
    %2 = arith.index_cast %c0_i32 : i32 to index
    %c0_1 = arith.constant 0 : index
    %c0_2 = arith.constant 0 : index
    %3 = vector.load %arg2[%c0, %2, %c0_1, %c0_2] : memref<1x4x2x128xf32, #tpu.memory_space<vmem>>, vector<1x1x2x128xf32>
    %4 = vector.shape_cast %3 : vector<1x1x2x128xf32> to vector<2x128xf32>
    %5 = vector.shape_cast %4 : vector<2x128xf32> to vector<2x1x128xf32>
    %c0_3 = arith.constant 0 : index
    %6 = arith.index_cast %c0_i32 : i32 to index
    %c0_4 = arith.constant 0 : index
    %c0_5 = arith.constant 0 : index
    %7 = vector.load %arg3[%c0_3, %6, %c0_4, %c0_5] : memref<1x4x2x128xf32, #tpu.memory_space<vmem>>, vector<1x1x2x128xf32>
    %8 = vector.shape_cast %7 : vector<1x1x2x128xf32> to vector<2x128xf32>
    %9 = vector.shape_cast %8 : vector<2x128xf32> to vector<2x1x128xf32>
    %c0_6 = arith.constant 0 : index
    %10 = arith.index_cast %c0_i32 : i32 to index
    %c0_7 = arith.constant 0 : index
    %c0_8 = arith.constant 0 : index
    %11 = vector.load %arg4[%c0_6, %10, %c0_7, %c0_8] : memref<1x4x4x128xf32, #tpu.memory_space<vmem>>, vector<1x1x4x128xf32>
    %12 = vector.shape_cast %11 : vector<1x1x4x128xf32> to vector<4x128xf32>
    %13 = vector.shape_cast %12 : vector<4x128xf32> to vector<1x4x128xf32>
    %c0_9 = arith.constant 0 : index
    %14 = arith.index_cast %c0_i32 : i32 to index
    %c0_10 = arith.constant 0 : index
    %c0_11 = arith.constant 0 : index
    %15 = vector.load %arg5[%c0_9, %14, %c0_10, %c0_11] : memref<1x4x4x128xf32, #tpu.memory_space<vmem>>, vector<1x1x4x128xf32>
    %16 = vector.shape_cast %15 : vector<1x1x4x128xf32> to vector<4x128xf32>
    %17 = vector.shape_cast %16 : vector<4x128xf32> to vector<1x4x128xf32>
    %18 = vector.broadcast %5 : vector<2x1x128xf32> to vector<2x4x128xf32>
    %19 = vector.broadcast %13 : vector<1x4x128xf32> to vector<2x4x128xf32>
    %20 = arith.mulf %18, %19 : vector<2x4x128xf32>
    %21 = vector.broadcast %9 : vector<2x1x128xf32> to vector<2x4x128xf32>
    %22 = vector.broadcast %17 : vector<1x4x128xf32> to vector<2x4x128xf32>
    %23 = arith.mulf %21, %22 : vector<2x4x128xf32>
    %24 = arith.subf %20, %23 : vector<2x4x128xf32>
    %25 = arith.addf %0, %24 : vector<2x4x128xf32>
    %26 = vector.broadcast %5 : vector<2x1x128xf32> to vector<2x4x128xf32>
    %27 = vector.broadcast %17 : vector<1x4x128xf32> to vector<2x4x128xf32>
    %28 = arith.mulf %26, %27 : vector<2x4x128xf32>
    %29 = vector.broadcast %9 : vector<2x1x128xf32> to vector<2x4x128xf32>
    %30 = vector.broadcast %13 : vector<1x4x128xf32> to vector<2x4x128xf32>
    %31 = arith.mulf %29, %30 : vector<2x4x128xf32>
    %32 = arith.addf %28, %31 : vector<2x4x128xf32>
    %33 = arith.addf %1, %32 : vector<2x4x128xf32>
    %c1_i32 = arith.constant 1 : i32
    %c0_12 = arith.constant 0 : index
    %34 = arith.index_cast %c1_i32 : i32 to index
    %c0_13 = arith.constant 0 : index
    %c0_14 = arith.constant 0 : index
    %35 = vector.load %arg2[%c0_12, %34, %c0_13, %c0_14] : memref<1x4x2x128xf32, #tpu.memory_space<vmem>>, vector<1x1x2x128xf32>
    %36 = vector.shape_cast %35 : vector<1x1x2x128xf32> to vector<2x128xf32>
    %37 = vector.shape_cast %36 : vector<2x128xf32> to vector<2x1x128xf32>
    %c0_15 = arith.constant 0 : index
    %38 = arith.index_cast %c1_i32 : i32 to index
    %c0_16 = arith.constant 0 : index
    %c0_17 = arith.constant 0 : index
    %39 = vector.load %arg3[%c0_15, %38, %c0_16, %c0_17] : memref<1x4x2x128xf32, #tpu.memory_space<vmem>>, vector<1x1x2x128xf32>
    %40 = vector.shape_cast %39 : vector<1x1x2x128xf32> to vector<2x128xf32>
    %41 = vector.shape_cast %40 : vector<2x128xf32> to vector<2x1x128xf32>
    %c0_18 = arith.constant 0 : index
    %42 = arith.index_cast %c1_i32 : i32 to index
    %c0_19 = arith.constant 0 : index
    %c0_20 = arith.constant 0 : index
    %43 = vector.load %arg4[%c0_18, %42, %c0_19, %c0_20] : memref<1x4x4x128xf32, #tpu.memory_space<vmem>>, vector<1x1x4x128xf32>
    %44 = vector.shape_cast %43 : vector<1x1x4x128xf32> to vector<4x128xf32>
    %45 = vector.shape_cast %44 : vector<4x128xf32> to vector<1x4x128xf32>
    %c0_21 = arith.constant 0 : index
    %46 = arith.index_cast %c1_i32 : i32 to index
    %c0_22 = arith.constant 0 : index
    %c0_23 = arith.constant 0 : index
    %47 = vector.load %arg5[%c0_21, %46, %c0_22, %c0_23] : memref<1x4x4x128xf32, #tpu.memory_space<vmem>>, vector<1x1x4x128xf32>
    %48 = vector.shape_cast %47 : vector<1x1x4x128xf32> to vector<4x128xf32>
    %49 = vector.shape_cast %48 : vector<4x128xf32> to vector<1x4x128xf32>
    %50 = vector.broadcast %37 : vector<2x1x128xf32> to vector<2x4x128xf32>
    %51 = vector.broadcast %45 : vector<1x4x128xf32> to vector<2x4x128xf32>
    %52 = arith.mulf %50, %51 : vector<2x4x128xf32>
    %53 = vector.broadcast %41 : vector<2x1x128xf32> to vector<2x4x128xf32>
    %54 = vector.broadcast %49 : vector<1x4x128xf32> to vector<2x4x128xf32>
    %55 = arith.mulf %53, %54 : vector<2x4x128xf32>
    %56 = arith.subf %52, %55 : vector<2x4x128xf32>
    %57 = arith.addf %25, %56 : vector<2x4x128xf32>
    %58 = vector.broadcast %37 : vector<2x1x128xf32> to vector<2x4x128xf32>
    %59 = vector.broadcast %49 : vector<1x4x128xf32> to vector<2x4x128xf32>
    %60 = arith.mulf %58, %59 : vector<2x4x128xf32>
    %61 = vector.broadcast %41 : vector<2x1x128xf32> to vector<2x4x128xf32>
    %62 = vector.broadcast %45 : vector<1x4x128xf32> to vector<2x4x128xf32>
    %63 = arith.mulf %61, %62 : vector<2x4x128xf32>
    %64 = arith.addf %60, %63 : vector<2x4x128xf32>
    %65 = arith.addf %33, %64 : vector<2x4x128xf32>
    %c2_i32 = arith.constant 2 : i32
    %c0_24 = arith.constant 0 : index
    %66 = arith.index_cast %c2_i32 : i32 to index
    %c0_25 = arith.constant 0 : index
    %c0_26 = arith.constant 0 : index
    %67 = vector.load %arg2[%c0_24, %66, %c0_25, %c0_26] : memref<1x4x2x128xf32, #tpu.memory_space<vmem>>, vector<1x1x2x128xf32>
    %68 = vector.shape_cast %67 : vector<1x1x2x128xf32> to vector<2x128xf32>
    %69 = vector.shape_cast %68 : vector<2x128xf32> to vector<2x1x128xf32>
    %c0_27 = arith.constant 0 : index
    %70 = arith.index_cast %c2_i32 : i32 to index
    %c0_28 = arith.constant 0 : index
    %c0_29 = arith.constant 0 : index
    %71 = vector.load %arg3[%c0_27, %70, %c0_28, %c0_29] : memref<1x4x2x128xf32, #tpu.memory_space<vmem>>, vector<1x1x2x128xf32>
    %72 = vector.shape_cast %71 : vector<1x1x2x128xf32> to vector<2x128xf32>
    %73 = vector.shape_cast %72 : vector<2x128xf32> to vector<2x1x128xf32>
    %c0_30 = arith.constant 0 : index
    %74 = arith.index_cast %c2_i32 : i32 to index
    %c0_31 = arith.constant 0 : index
    %c0_32 = arith.constant 0 : index
    %75 = vector.load %arg4[%c0_30, %74, %c0_31, %c0_32] : memref<1x4x4x128xf32, #tpu.memory_space<vmem>>, vector<1x1x4x128xf32>
    %76 = vector.shape_cast %75 : vector<1x1x4x128xf32> to vector<4x128xf32>
    %77 = vector.shape_cast %76 : vector<4x128xf32> to vector<1x4x128xf32>
    %c0_33 = arith.constant 0 : index
    %78 = arith.index_cast %c2_i32 : i32 to index
    %c0_34 = arith.constant 0 : index
    %c0_35 = arith.constant 0 : index
    %79 = vector.load %arg5[%c0_33, %78, %c0_34, %c0_35] : memref<1x4x4x128xf32, #tpu.memory_space<vmem>>, vector<1x1x4x128xf32>
    %80 = vector.shape_cast %79 : vector<1x1x4x128xf32> to vector<4x128xf32>
    %81 = vector.shape_cast %80 : vector<4x128xf32> to vector<1x4x128xf32>
    %82 = vector.broadcast %69 : vector<2x1x128xf32> to vector<2x4x128xf32>
    %83 = vector.broadcast %77 : vector<1x4x128xf32> to vector<2x4x128xf32>
    %84 = arith.mulf %82, %83 : vector<2x4x128xf32>
    %85 = vector.broadcast %73 : vector<2x1x128xf32> to vector<2x4x128xf32>
    %86 = vector.broadcast %81 : vector<1x4x128xf32> to vector<2x4x128xf32>
    %87 = arith.mulf %85, %86 : vector<2x4x128xf32>
    %88 = arith.subf %84, %87 : vector<2x4x128xf32>
    %89 = arith.addf %57, %88 : vector<2x4x128xf32>
    %90 = vector.broadcast %69 : vector<2x1x128xf32> to vector<2x4x128xf32>
    %91 = vector.broadcast %81 : vector<1x4x128xf32> to vector<2x4x128xf32>
    %92 = arith.mulf %90, %91 : vector<2x4x128xf32>
    %93 = vector.broadcast %73 : vector<2x1x128xf32> to vector<2x4x128xf32>
    %94 = vector.broadcast %77 : vector<1x4x128xf32> to vector<2x4x128xf32>
    %95 = arith.mulf %93, %94 : vector<2x4x128xf32>
    %96 = arith.addf %92, %95 : vector<2x4x128xf32>
    %97 = arith.addf %65, %96 : vector<2x4x128xf32>
    %c3_i32 = arith.constant 3 : i32
    %c0_36 = arith.constant 0 : index
    %98 = arith.index_cast %c3_i32 : i32 to index
    %c0_37 = arith.constant 0 : index
    %c0_38 = arith.constant 0 : index
    %99 = vector.load %arg2[%c0_36, %98, %c0_37, %c0_38] : memref<1x4x2x128xf32, #tpu.memory_space<vmem>>, vector<1x1x2x128xf32>
    %100 = vector.shape_cast %99 : vector<1x1x2x128xf32> to vector<2x128xf32>
    %101 = vector.shape_cast %100 : vector<2x128xf32> to vector<2x1x128xf32>
    %c0_39 = arith.constant 0 : index
    %102 = arith.index_cast %c3_i32 : i32 to index
    %c0_40 = arith.constant 0 : index
    %c0_41 = arith.constant 0 : index
    %103 = vector.load %arg3[%c0_39, %102, %c0_40, %c0_41] : memref<1x4x2x128xf32, #tpu.memory_space<vmem>>, vector<1x1x2x128xf32>
    %104 = vector.shape_cast %103 : vector<1x1x2x128xf32> to vector<2x128xf32>
    %105 = vector.shape_cast %104 : vector<2x128xf32> to vector<2x1x128xf32>
    %c0_42 = arith.constant 0 : index
    %106 = arith.index_cast %c3_i32 : i32 to index
    %c0_43 = arith.constant 0 : index
    %c0_44 = arith.constant 0 : index
    %107 = vector.load %arg4[%c0_42, %106, %c0_43, %c0_44] : memref<1x4x4x128xf32, #tpu.memory_space<vmem>>, vector<1x1x4x128xf32>
    %108 = vector.shape_cast %107 : vector<1x1x4x128xf32> to vector<4x128xf32>
    %109 = vector.shape_cast %108 : vector<4x128xf32> to vector<1x4x128xf32>
    %c0_45 = arith.constant 0 : index
    %110 = arith.index_cast %c3_i32 : i32 to index
    %c0_46 = arith.constant 0 : index
    %c0_47 = arith.constant 0 : index
    %111 = vector.load %arg5[%c0_45, %110, %c0_46, %c0_47] : memref<1x4x4x128xf32, #tpu.memory_space<vmem>>, vector<1x1x4x128xf32>
    %112 = vector.shape_cast %111 : vector<1x1x4x128xf32> to vector<4x128xf32>
    %113 = vector.shape_cast %112 : vector<4x128xf32> to vector<1x4x128xf32>
    %114 = vector.broadcast %101 : vector<2x1x128xf32> to vector<2x4x128xf32>
    %115 = vector.broadcast %109 : vector<1x4x128xf32> to vector<2x4x128xf32>
    %116 = arith.mulf %114, %115 : vector<2x4x128xf32>
    %117 = vector.broadcast %105 : vector<2x1x128xf32> to vector<2x4x128xf32>
    %118 = vector.broadcast %113 : vector<1x4x128xf32> to vector<2x4x128xf32>
    %119 = arith.mulf %117, %118 : vector<2x4x128xf32>
    %120 = arith.subf %116, %119 : vector<2x4x128xf32>
    %121 = arith.addf %89, %120 : vector<2x4x128xf32>
    %122 = vector.broadcast %101 : vector<2x1x128xf32> to vector<2x4x128xf32>
    %123 = vector.broadcast %113 : vector<1x4x128xf32> to vector<2x4x128xf32>
    %124 = arith.mulf %122, %123 : vector<2x4x128xf32>
    %125 = vector.broadcast %105 : vector<2x1x128xf32> to vector<2x4x128xf32>
    %126 = vector.broadcast %109 : vector<1x4x128xf32> to vector<2x4x128xf32>
    %127 = arith.mulf %125, %126 : vector<2x4x128xf32>
    %128 = arith.addf %124, %127 : vector<2x4x128xf32>
    %129 = arith.addf %97, %128 : vector<2x4x128xf32>
    %c4_i32 = arith.constant 4 : i32
    %c0_48 = arith.constant 0 : index
    %c0_49 = arith.constant 0 : index
    %c0_50 = arith.constant 0 : index
    %c0_51 = arith.constant 0 : index
    %130 = vector.load %arg6[%c0_48, %c0_49, %c0_50, %c0_51] : memref<1x2x4x128xf32, #tpu.memory_space<vmem>>, vector<1x2x4x128xf32>
    %131 = vector.shape_cast %130 : vector<1x2x4x128xf32> to vector<2x4x128xf32>
    %132 = vector.shape_cast %121 : vector<2x4x128xf32> to vector<1x2x4x128xf32>
    tpu.vector_store %arg6[%c0_48, %c0_49, %c0_50, %c0_51], %132 {strides = array<i32>} : memref<1x2x4x128xf32, #tpu.memory_space<vmem>>, vector<1x2x4x128xf32>,
    %c0_52 = arith.constant 0 : index
    %c0_53 = arith.constant 0 : index
    %c0_54 = arith.constant 0 : index
    %c0_55 = arith.constant 0 : index
    %133 = vector.load %arg7[%c0_52, %c0_53, %c0_54, %c0_55] : memref<1x2x4x128xf32, #tpu.memory_space<vmem>>, vector<1x2x4x128xf32>
    %134 = vector.shape_cast %133 : vector<1x2x4x128xf32> to vector<2x4x128xf32>
    %135 = vector.shape_cast %129 : vector<2x4x128xf32> to vector<1x2x4x128xf32>
    tpu.vector_store %arg7[%c0_52, %c0_53, %c0_54, %c0_55], %135 {strides = array<i32>} : memref<1x2x4x128xf32, #tpu.memory_space<vmem>>, vector<1x2x4x128xf32>,
    return
  }
  func.func @transform_0(%arg0: i32, %arg1: i32) -> (i32, i32, i32, i32) {
    %c0_i32 = arith.constant 0 : i32
    %c0_i32_0 = arith.constant 0 : i32
    %c0_i32_1 = arith.constant 0 : i32
    return %arg0, %c0_i32, %c0_i32_0, %arg1 : i32, i32, i32, i32
  }
  func.func @transform_1(%arg0: i32, %arg1: i32) -> (i32, i32, i32, i32) {
    %c0_i32 = arith.constant 0 : i32
    %c0_i32_0 = arith.constant 0 : i32
    %c0_i32_1 = arith.constant 0 : i32
    return %arg0, %c0_i32, %c0_i32_0, %arg1 : i32, i32, i32, i32
  }
  func.func @transform_2(%arg0: i32, %arg1: i32) -> (i32, i32, i32, i32) {
    %c0_i32 = arith.constant 0 : i32
    %c0_i32_0 = arith.constant 0 : i32
    %c0_i32_1 = arith.constant 0 : i32
    return %arg0, %c0_i32, %c0_i32_0, %arg1 : i32, i32, i32, i32
  }
  func.func @transform_3(%arg0: i32, %arg1: i32) -> (i32, i32, i32, i32) {
    %c0_i32 = arith.constant 0 : i32
    %c0_i32_0 = arith.constant 0 : i32
    %c0_i32_1 = arith.constant 0 : i32
    return %arg0, %c0_i32, %c0_i32_0, %arg1 : i32, i32, i32, i32
  }
  func.func @transform_4(%arg0: i32, %arg1: i32) -> (i32, i32, i32, i32) {
    %c0_i32 = arith.constant 0 : i32
    %c0_i32_0 = arith.constant 0 : i32
    %c0_i32_1 = arith.constant 0 : i32
    return %arg0, %c0_i32, %c0_i32_0, %arg1 : i32, i32, i32, i32
  }
  func.func @transform_5(%arg0: i32, %arg1: i32) -> (i32, i32, i32, i32) {
    %c0_i32 = arith.constant 0 : i32
    %c0_i32_0 = arith.constant 0 : i32
    %c0_i32_1 = arith.constant 0 : i32
    return %arg0, %c0_i32, %c0_i32_0, %arg1 : i32, i32, i32, i32
  }
}

module attributes {stable_mosaic.version = 11 : i64} {
  func.func @_pointwise_conv_kernel(%arg0: i32, %arg1: i32, %arg2: memref<1x4x256xf32, #tpu.memory_space<vmem>>, %arg3: memref<4x4xf32, #tpu.memory_space<vmem>>, %arg4: memref<4x1xf32, #tpu.memory_space<vmem>>, %arg5: memref<1x4x256xf32, #tpu.memory_space<vmem>>) attributes {dimension_semantics = [#tpu.dimension_semantics<parallel>, #tpu.dimension_semantics<parallel>], iteration_bounds = array<i64: 2, 1>, scalar_prefetch = 0 : i64, scratch_operands = 0 : i64, tpu.core_type = #tpu.core_type<tc>, window_params = [{transform_indices = @transform_0, window_bounds = array<i64: 1, 4, 256>}, {pipeline_mode = #tpu.pipeline_mode<synchronous>, transform_indices = @transform_1, window_bounds = array<i64: 4, 4>}, {pipeline_mode = #tpu.pipeline_mode<synchronous>, transform_indices = @transform_2, window_bounds = array<i64: 4, 1>}, {transform_indices = @transform_3, window_bounds = array<i64: 1, 4, 256>}]} {
    %c0 = arith.constant 0 : index
    %c0_0 = arith.constant 0 : index
    %c0_1 = arith.constant 0 : index
    %0 = vector.load %arg2[%c0, %c0_0, %c0_1] : memref<1x4x256xf32, #tpu.memory_space<vmem>>, vector<1x4x256xf32>
    %1 = vector.shape_cast %0 : vector<1x4x256xf32> to vector<4x256xf32>
    %c0_2 = arith.constant 0 : index
    %c0_3 = arith.constant 0 : index
    %2 = vector.load %arg3[%c0_2, %c0_3] : memref<4x4xf32, #tpu.memory_space<vmem>>, vector<4x4xf32>
    %c0_4 = arith.constant 0 : index
    %c0_5 = arith.constant 0 : index
    %3 = vector.load %arg4[%c0_4, %c0_5] : memref<4x1xf32, #tpu.memory_space<vmem>>, vector<4x1xf32>
    %4 = vector.shape_cast %3 : vector<4x1xf32> to vector<4x1xf32>
    %5 = vector.broadcast %4 : vector<4x1xf32> to vector<4x256xf32>
    %6 = vector.extract_strided_slice %2 {offsets = [0, 0], sizes = [4, 1], strides = [1, 1]} : vector<4x4xf32> to vector<4x1xf32>
    %7 = vector.extract_strided_slice %1 {offsets = [0, 0], sizes = [1, 256], strides = [1, 1]} : vector<4x256xf32> to vector<1x256xf32>
    %8 = vector.broadcast %6 : vector<4x1xf32> to vector<4x256xf32>
    %9 = vector.broadcast %7 : vector<1x256xf32> to vector<4x256xf32>
    %10 = arith.mulf %8, %9 : vector<4x256xf32>
    %11 = arith.addf %5, %10 : vector<4x256xf32>
    %12 = vector.extract_strided_slice %2 {offsets = [0, 1], sizes = [4, 1], strides = [1, 1]} : vector<4x4xf32> to vector<4x1xf32>
    %13 = vector.extract_strided_slice %1 {offsets = [1, 0], sizes = [1, 256], strides = [1, 1]} : vector<4x256xf32> to vector<1x256xf32>
    %14 = vector.broadcast %12 : vector<4x1xf32> to vector<4x256xf32>
    %15 = vector.broadcast %13 : vector<1x256xf32> to vector<4x256xf32>
    %16 = arith.mulf %14, %15 : vector<4x256xf32>
    %17 = arith.addf %11, %16 : vector<4x256xf32>
    %18 = vector.extract_strided_slice %2 {offsets = [0, 2], sizes = [4, 1], strides = [1, 1]} : vector<4x4xf32> to vector<4x1xf32>
    %19 = vector.extract_strided_slice %1 {offsets = [2, 0], sizes = [1, 256], strides = [1, 1]} : vector<4x256xf32> to vector<1x256xf32>
    %20 = vector.broadcast %18 : vector<4x1xf32> to vector<4x256xf32>
    %21 = vector.broadcast %19 : vector<1x256xf32> to vector<4x256xf32>
    %22 = arith.mulf %20, %21 : vector<4x256xf32>
    %23 = arith.addf %17, %22 : vector<4x256xf32>
    %24 = vector.extract_strided_slice %2 {offsets = [0, 3], sizes = [4, 1], strides = [1, 1]} : vector<4x4xf32> to vector<4x1xf32>
    %25 = vector.extract_strided_slice %1 {offsets = [3, 0], sizes = [1, 256], strides = [1, 1]} : vector<4x256xf32> to vector<1x256xf32>
    %26 = vector.broadcast %24 : vector<4x1xf32> to vector<4x256xf32>
    %27 = vector.broadcast %25 : vector<1x256xf32> to vector<4x256xf32>
    %28 = arith.mulf %26, %27 : vector<4x256xf32>
    %29 = arith.addf %23, %28 : vector<4x256xf32>
    %c0_6 = arith.constant 0 : index
    %c0_7 = arith.constant 0 : index
    %c0_8 = arith.constant 0 : index
    %30 = vector.load %arg5[%c0_6, %c0_7, %c0_8] : memref<1x4x256xf32, #tpu.memory_space<vmem>>, vector<1x4x256xf32>
    %31 = vector.shape_cast %30 : vector<1x4x256xf32> to vector<4x256xf32>
    %32 = vector.shape_cast %29 : vector<4x256xf32> to vector<1x4x256xf32>
    tpu.vector_store %arg5[%c0_6, %c0_7, %c0_8], %32 {strides = array<i32>} : memref<1x4x256xf32, #tpu.memory_space<vmem>>, vector<1x4x256xf32>,
    return
  }
  func.func @transform_0(%arg0: i32, %arg1: i32) -> (i32, i32, i32) {
    %c0_i32 = arith.constant 0 : i32
    %c0_i32_0 = arith.constant 0 : i32
    return %arg0, %c0_i32, %arg1 : i32, i32, i32
  }
  func.func @transform_1(%arg0: i32, %arg1: i32) -> (i32, i32) {
    %c0_i32 = arith.constant 0 : i32
    %c0_i32_0 = arith.constant 0 : i32
    %c0_i32_1 = arith.constant 0 : i32
    return %c0_i32, %c0_i32_0 : i32, i32
  }
  func.func @transform_2(%arg0: i32, %arg1: i32) -> (i32, i32) {
    %c0_i32 = arith.constant 0 : i32
    %c0_i32_0 = arith.constant 0 : i32
    %c0_i32_1 = arith.constant 0 : i32
    return %c0_i32, %c0_i32_0 : i32, i32
  }
  func.func @transform_3(%arg0: i32, %arg1: i32) -> (i32, i32, i32) {
    %c0_i32 = arith.constant 0 : i32
    %c0_i32_0 = arith.constant 0 : i32
    return %arg0, %c0_i32, %arg1 : i32, i32, i32
  }
}

</mosaic_0001>

<bundles_post_ra>
// kernel: custom-call
= control target key start
LH: loop header
LB: loop body
LE: loop exit
PB: predicated region body
PF: predicated region fallthrough
CT: control target
= control target key end

     0   :  { %2 = vsyncpa [#allocation0], 0  ;;  %s61_s0 = inlined_call_operand.hbm [shape: c64[4,4,7,8], index: 0, kind: input, shape index: {}]   ;;  %s62_s1 = inlined_call_operand.vmem [shape: f32[4,4,7,8], index: 1, kind: output, shape index: {}]  }
   0x1   :  { %s3_s8 = sshll.u32 %s62_s1, 4  ;;  %s9_s11 = scalar_lea.hbm %s61_s0, 1792  ;;  %s4_s8 = int_to_ptr.vmem [resolvable:$true] %s3_s8 }
   0x2   :  { %p10_p0 = scmp.ne.s32.totalorder %s61_s0, %s9_s11  ;;  %s11_s16 = scalar_lea.hbm %s61_s0, 3584 }
   0x3   :  { %p12_p1 = scmp.lt.u32.totalorder %s11_s16, %s9_s11  ;;  %p13_p2 = scmp.lt.u32.totalorder %s9_s11, %s61_s0 }
   0x5   :  { %p14_p3 = por %p13_p2, %p12_p1 }
   0x7   :  { %p15_p4 = pnand %p14_p3, %p10_p0 }
   0x9   :  { %18 = shalt.err (!%p15_p4)  }
   0xa   :  { %s19_s1 = scalar_lea.vmem %s4_s8, 1792  ;;  %p24_p6 = scmp.lt.s32.totalorder %s4_s8, %s4_s8 }
   0xb   :  { %p20_p5 = scmp.ne.s32.totalorder %s4_s8, %s19_s1  ;;  %p25_p7 = scmp.lt.s32.totalorder %s19_s1, %s19_s1 }
   0xd   :  { %p26_p8 = por %p25_p7, %p24_p6 }
   0xf   :  { %p27_p9 = pnand %p26_p8, %p20_p5 }
  0x11   :  { %30 = shalt.err (!%p27_p9)  }
  0x12   :  { %6 = dma.hbm_to_vmem [thread:$0]  %s61_s0, 1792, %s4_s8, [#allocation0] }
  0x13   :  { %31 = dma.done.wait [#allocation0], 1792  }
  0x14   :  { %32 = vsyncadd [#allocation0], 4294965504 }
  0x15   :  { %8 = vsyncpa [#allocation0], 1 }

// kernel: custom-call.1
= control target key start
LH: loop header
LB: loop body
LE: loop exit
PB: predicated region body
PF: predicated region fallthrough
CT: control target
= control target key end

     0   :  { %s59_s0 = inlined_call_operand.hbm [shape: c64[4,4,7,8], index: 0, kind: input, shape index: {}]   ;;  %s60_s1 = inlined_call_operand.vmem [shape: f32[4,4,7,8], index: 1, kind: output, shape index: {}]  }
   0x1   :  { %s2_s8 = scalar_lea.hbm %s59_s0, 1792 }
   0x2   :  { %3 = vsyncpa [#allocation0], 0  ;;  %s4_s11 = sshll.u32 %s60_s1, 4  ;;  %s34_s14 = scalar_lea.hbm %s59_s0, 3584  ;;  %s5_s11 = int_to_ptr.vmem [resolvable:$true] %s4_s11 }
   0x3   :  { %p11_p0 = scmp.ne.s32.totalorder %s2_s8, %s34_s14  ;;  %p13_p1 = scmp.lt.u32.totalorder %s2_s8, %s59_s0 }
   0x4   :  { %p14_p2 = scmp.lt.u32.totalorder %s34_s14, %s34_s14  ;;  %p16_p4 = scmp.lt.u32.totalorder %s34_s14, %s2_s8 }
   0x6   :  { %p15_p3 = por %p14_p2, %p13_p1 }
   0x8   :  { %p17_p5 = por %p16_p4, %p15_p3 }
   0xa   :  { %p18_p6 = pnand %p17_p5, %p11_p0 }
   0xc   :  { %21 = shalt.err (!%p18_p6)  }
   0xd   :  { %s22_s17 = scalar_lea.vmem %s5_s11, 1792  ;;  %p27_p8 = scmp.lt.s32.totalorder %s5_s11, %s5_s11 }
   0xe   :  { %p23_p7 = scmp.ne.s32.totalorder %s5_s11, %s22_s17  ;;  %p28_p9 = scmp.lt.s32.totalorder %s22_s17, %s22_s17 }
  0x10   :  { %p29_p10 = por %p28_p9, %p27_p8 }
  0x12   :  { %p30_p11 = pnand %p29_p10, %p23_p7 }
  0x14   :  { %33 = shalt.err (!%p30_p11)  }
  0x15   :  { %7 = dma.hbm_to_vmem [thread:$0]  %s2_s8, 1792, %s5_s11, [#allocation0] }
  0x16   :  { %35 = dma.done.wait [#allocation0], 1792  }
  0x17   :  { %36 = vsyncadd [#allocation0], 4294965504 }
  0x18   :  { %9 = vsyncpa [#allocation0], 1 }

// kernel: reverse.0
= control target key start
LH: loop header
LB: loop body
LE: loop exit
PB: predicated region body
PF: predicated region fallthrough
CT: control target
= control target key end

     0   :  { %v71_v3 = vlaneseq  ;;  %v64_v9 = vld [vmem:[#allocation0 + $0x7] ss:$-1 sm:$0xff]  ;;  %v78_v12 = vld [vmem:[#allocation0 + $0x17] ss:$-1 sm:$0xff]  ;;  %s329_s0 = inlined_call_operand.vmem [shape: f32[2,4,16,7], index: 0, kind: input, shape index: {}]   ;;  %s330_s1 = inlined_call_operand.vmem [shape: f32[2,4,16,7], index: 1, kind: output, shape index: {}]  }
   0x1   :  { %v44_v0 = vld [vmem:[%s329_s0] sm:$0xff]  ;;  %v46_v1 = vld [vmem:[%s329_s0 + $0x8] sm:$0xff]  ;;  %v48_v2 = vld [vmem:[%s329_s0 + $0x10] sm:$0xff]  ;;  %v65_v10 = vrot.slane %v64_v9, 1  ;;  %v79_v14 = vrot.slane %v78_v12, 1 }
   0x2   :  { %45 = vst [vmem:[#allocation0 + $0x8] sm:$0xff] %v44_v0  ;;  %47 = vst [vmem:[#allocation0 + $0x18] sm:$0xff] %v46_v1  ;;  %v50_v4 = vld [vmem:[%s329_s0 + $0x18] sm:$0xff]  ;;  %v52_v5 = vld [vmem:[%s329_s0 + $0x20] sm:$0xff]  ;;  %v72_v11 = vshrl.u32 %v71_v3, 7 }
   0x3   :  { %49 = vst [vmem:[#allocation0 + $0x28] sm:$0xff] %v48_v2  ;;  %v54_v6 = vld [vmem:[%s329_s0 + $0x28] sm:$0xff]  ;;  %51 = vst [vmem:[#allocation0 + $0x38] sm:$0xff] %v50_v4  ;;  %v56_v7 = vld [vmem:[%s329_s0 + $0x30] sm:$0xff] }
   0x4   :  { %53 = vst [vmem:[#allocation0 + $0x48] sm:$0xff] %v52_v5  ;;  %55 = vst [vmem:[#allocation0 + $0x58] sm:$0xff] %v54_v6  ;;  %v58_v8 = vld [vmem:[%s329_s0 + $0x38] sm:$0xff]  ;;  %v92_v13 = vld [vmem:[#allocation0 + $0x27] ss:$-1 sm:$0xff]  ;;  %vm73_vm0 = vcmp.lt.s32.totalorder %v72_v11, 7 }
   0x5   :  { %57 = vst [vmem:[#allocation0 + $0x68] sm:$0xff] %v56_v7  ;;  %59 = vst [vmem:[#allocation0 + $0x78] sm:$0xff] %v58_v8  ;;  %v93_v15 = vrot.slane %v92_v13, 1  ;;  %v106_v16 = vld [vmem:[#allocation0 + $0x37] ss:$-1 sm:$0xff] }
   0x6   :  { %66 = vst [vmem:[#allocation1] sm:$0xff] %v65_v10  ;;  %v107_v17 = vrot.slane %v106_v16, 1  ;;  %v120_v18 = vld [vmem:[#allocation0 + $0x47] ss:$-1 sm:$0xff]  ;;  %v134_v19 = vld [vmem:[#allocation0 + $0x57] ss:$-1 sm:$0xff] }
   0x7   :  { %80 = vst [vmem:[#allocation1 + $0x8] sm:$0xff] %v79_v14  ;;  %94 = vst [vmem:[#allocation1 + $0x10] sm:$0xff] %v93_v15  ;;  %v121_v20 = vrot.slane %v120_v18, 1  ;;  %v135_v21 = vrot.slane %v134_v19, 1  ;;  %v148_v22 = vld [vmem:[#allocation0 + $0x67] ss:$-1 sm:$0xff] }
   0x8   :  { %v162_v23 = vld [vmem:[#allocation0 + $0x77] ss:$-1 sm:$0xff]  ;;  %108 = vst [vmem:[#allocation1 + $0x18] sm:$0xff] %v107_v17  ;;  %v149_v24 = vrot.slane %v148_v22, 1 }
   0x9   :  { %v163_v25 = vrot.slane %v162_v23, 1  ;;  %v69_v26 = vld [vmem:[#allocation0 + $0xf] ss:$-1 sm:$0xff]  ;;  %v83_v27 = vld [vmem:[#allocation0 + $0x1f] ss:$-1 sm:$0xff]  ;;  %122 = vst [vmem:[#allocation1 + $0x20] sm:$0xff] %v121_v20 }
   0xa   :  { %v97_v28 = vld [vmem:[#allocation0 + $0x2f] ss:$-1 sm:$0xff]  ;;  %136 = vst [vmem:[#allocation1 + $0x28] sm:$0xff] %v135_v21  ;;  %v70_v29 = vrot.slane %v69_v26, 1  ;;  %v84_v30 = vrot.slane %v83_v27, 1  ;;  %150 = vst [vmem:[#allocation1 + $0x30] sm:$0xff] %v149_v24 }
   0xb   :  { %v98_v31 = vrot.slane %v97_v28, 1  ;;  %v111_v32 = vld [vmem:[#allocation0 + $0x3f] ss:$-1 sm:$0xff]  ;;  %164 = vst [vmem:[#allocation1 + $0x38] sm:$0xff] %v163_v25  ;;  %v125_v34 = vld [vmem:[#allocation0 + $0x4f] ss:$-1 sm:$0xff] }
   0xc   :  { %v112_v33 = vrot.slane %v111_v32, 1  ;;  %v139_v35 = vld [vmem:[#allocation0 + $0x5f] ss:$-1 sm:$0xff]  ;;  %74 = vst.msk [vmem:[#allocation1] sm:$0xff] %vm73_vm0, %v70_v29  ;;  %88 = vst.msk [vmem:[#allocation1 + $0x8] sm:$0xff] %vm73_vm0, %v84_v30  ;;  %v126_v36 = vrot.slane %v125_v34, 1 }
   0xd   :  { %102 = vst.msk [vmem:[#allocation1 + $0x10] sm:$0xff] %vm73_vm0, %v98_v31  ;;  %v140_v37 = vrot.slane %v139_v35, 1  ;;  %v153_v38 = vld [vmem:[#allocation0 + $0x6f] ss:$-1 sm:$0xff]  ;;  %v167_v39 = vld [vmem:[#allocation0 + $0x7f] ss:$-1 sm:$0xff] }
   0xe   :  { %116 = vst.msk [vmem:[#allocation1 + $0x18] sm:$0xff] %vm73_vm0, %v112_v33  ;;  %v154_v40 = vrot.slane %v153_v38, 1  ;;  %v168_v41 = vrot.slane %v167_v39, 1  ;;  %130 = vst.msk [vmem:[#allocation1 + $0x20] sm:$0xff] %vm73_vm0, %v126_v36 }
   0xf   :  { %144 = vst.msk [vmem:[#allocation1 + $0x28] sm:$0xff] %vm73_vm0, %v140_v37 }
  0x10   :  { %158 = vst.msk [vmem:[#allocation1 + $0x30] sm:$0xff] %vm73_vm0, %v154_v40  ;;  %172 = vst.msk [vmem:[#allocation1 + $0x38] sm:$0xff] %vm73_vm0, %v168_v41 }
  0x13   :  { %v214_v42 = vld [vmem:[#allocation1] sm:$0xff]  ;;  %v216_v43 = vld [vmem:[#allocation1 + $0x8] sm:$0xff] }
  0x14   :  { %v218_v44 = vld [vmem:[#allocation1 + $0x10] sm:$0xff]  ;;  %215 = vst [vmem:[%s330_s1] sm:$0xff] %v214_v42  ;;  %217 = vst [vmem:[%s330_s1 + $0x8] sm:$0xff] %v216_v43 }
  0x15   :  { %219 = vst [vmem:[%s330_s1 + $0x10] sm:$0xff] %v218_v44  ;;  %v220_v45 = vld [vmem:[#allocation1 + $0x18] sm:$0xff]  ;;  %v222_v46 = vld [vmem:[#allocation1 + $0x20] sm:$0xff] }
  0x16   :  { %221 = vst [vmem:[%s330_s1 + $0x18] sm:$0xff] %v220_v45  ;;  %v224_v47 = vld [vmem:[#allocation1 + $0x28] sm:$0xff]  ;;  %223 = vst [vmem:[%s330_s1 + $0x20] sm:$0xff] %v222_v46 }
  0x17   :  { %225 = vst [vmem:[%s330_s1 + $0x28] sm:$0xff] %v224_v47  ;;  %v226_v48 = vld [vmem:[#allocation1 + $0x30] sm:$0xff]  ;;  %v228_v49 = vld [vmem:[#allocation1 + $0x38] sm:$0xff] }
  0x18   :  { %227 = vst [vmem:[%s330_s1 + $0x30] sm:$0xff] %v226_v48  ;;  %229 = vst [vmem:[%s330_s1 + $0x38] sm:$0xff] %v228_v49 }

// kernel: fwd.2
= control target key start
LH: loop header
LB: loop body
LE: loop exit
PB: predicated region body
PF: predicated region fallthrough
CT: control target
= control target key end

     0   :  { %s1039_s18 = smov 0   ;;  %s1041_s19 = smov 0   ;;  %s1214_s0 = inlined_call_operand.vmem [shape: f32[2,4,2,128], index: 0, kind: input, shape index: {}]   ;;  %s1215_s1 = inlined_call_operand.vmem [shape: f32[2,4,2,128], index: 1, kind: input, shape index: {}]   ;;  %s1216_s2 = inlined_call_operand.vmem [shape: f32[2,4,4,128], index: 2, kind: input, shape index: {}]   ;;  %s1217_s3 = inlined_call_operand.vmem [shape: f32[2,4,4,128], index: 3, kind: input, shape index: {}]   ;;  %s1218_s4 = inlined_call_operand.vmem [shape: f32[2,2,4,128], index: 4, kind: output, shape index: {0}]   ;;  %s1219_s5 = inlined_call_operand.vmem [shape: f32[2,2,4,128], index: 5, kind: output, shape index: {1}]  }
   0x1   :  { %s1043_s20 = smov 0  }
   0x2 LB: > { %s28_s21 = sadd.s32 1, %s1002_s19  ;;  %p918_p0 = scmp.ge.s32.totalorder %s1006_s20, 1  ;;  %s1006_s20 = sphi %s1043_s20, %s16_s20   ;;  %s1002_s19 = sphi %s1041_s19, %s1221_s19   ;;  %s998_s18 = sphi %s1039_s18, %s1220_s18  }
   0x3   : > { %p30_p1 = scmp.ge.s32.totalorder %s28_s21, 2  ;;  %p256_p2 = scmp.lt.s32.totalorder %s1006_s20, 3 }
   0x5   : > { %s1223_s21 = smov (%p30_p1, %s28_s21), 0  ;;  %p257_p3 = pnand %p918_p0, %p256_p2 }
   0x6   : > { %p322_p4 = scmp.lt.s32.totalorder (!%p257_p3), %s998_s18, 1  ;;  %v383_v0 = vlaneseq (!%p257_p3)  ;;  %v1008_v1 = vmov (!%p257_p3), 1966171168  }
   0x7   : > { %260 = sbr.rel (%p257_p3) target bundleno = 51 (0x33), region = 36  ;;  %v381_v2 = vunpack.c.l.s4 (!%p257_p3), %v1008_v1 }
   0x8   : > { %v384_v3 = vshrl.u32 (!%p257_p3), %v383_v0, 7 }
   0x9   : > { %v382_v4 = vunpack.c.0.s8 (!%p257_p3), %v381_v2 }
   0xa   : > { %v1073_v6 = vsub.s32 (!%p257_p3), 0, %v384_v3 }
   0xb   : > { %v1071_v5 = vsub.s32 (!%p257_p3), %v382_v4, %v384_v3 }
   0xe   : > { %s1225_s18 = smov (!%p322_p4, %s998_s18), 1 }
   0xf   : > { %s1057_s22 = sshll.u32 %s1225_s18, 3  ;;  %s955_s23 = sshll.u32 %s1225_s18, 4 }
  0x10   : > { %s1063_s26 = scalar_lea.vmem %s1214_s0, %s1057_s22  ;;  %s1069_s29 = scalar_lea.vmem %s1215_s1, %s1057_s22 }
  0x11   : > { %s1078_s7 = scalar_lea.vmem %s1216_s2, %s955_s23  ;;  %s1083_s10 = scalar_lea.vmem %s1217_s3, %s955_s23  ;;  %v931_v7 = vld.sshfl [vmem:[%s1063_s26] sm:$0x11 pattern:$0x75316420] }
  0x12   : > { %v379_v8 = vcombine.high %v931_v7, %v931_v7  ;;  %v386_v9 = vrot.slane %v931_v7, %v1071_v5  ;;  %v932_v10 = vld.sshfl [vmem:[%s1069_s29] sm:$0x11 pattern:$0x75316420]  ;;  %v1105_v24 = vld [vmem:[%s1078_s7 + $0x4] sm:$0xf]  ;;  %s1167_s13 = scalar_lea.vmem %s1218_s4, %s1057_s22  ;;  %s369_s16 = scalar_lea.vmem %s1219_s5, %s1057_s22 }
  0x13   : > { %v403_v11 = vcombine.high %v932_v10, %v932_v10  ;;  %v410_v12 = vrot.slane %v932_v10, %v1071_v5  ;;  %v1090_v13 = vld [vmem:[%s1078_s7] sm:$0xf]  ;;  %v940_v25 = vld.sshfl [vmem:[%s1063_s26 + $0x4] sm:$0x11 pattern:$0x75316420] }
  0x14   : > { %v934_v14 = vld.sshfl [vmem:[%s1063_s26 + $0x2] sm:$0x11 pattern:$0x75316420]  ;;  %v1097_v16 = vrot.slane %v386_v9, %v1073_v6  ;;  %v393_v20 = vrot.slane %v379_v8, %v1071_v5  ;;  %v1112_v28 = vld [vmem:[%s1083_s10 + $0x4] sm:$0xf]  ;;  %v563_v30 = vrot.slane %v940_v25, %v1071_v5  ;;  %v556_v62 = vcombine.high %v940_v25, %v940_v25 }
  0x15   : > { %v1094_v15 = vld [vmem:[%s1083_s10] sm:$0xf]  ;;  %v466_v17 = vcombine.high %v934_v14, %v934_v14  ;;  %v473_v18 = vrot.slane %v934_v14, %v1071_v5  ;;  %v435_v21 = vrot.slane %v410_v12, %v1073_v6  ;;  %v417_v26 = vrot.slane %v403_v11, %v1071_v5  ;;  %v942_v31 = vld.sshfl [vmem:[%s1069_s29 + $0x4] sm:$0x11 pattern:$0x75316420] }
  0x16   : > { %v936_v19 = vld.sshfl [vmem:[%s1069_s29 + $0x2] sm:$0x11 pattern:$0x75316420]  ;;  %v430_v27 = vmul.f32 %v1097_v16, %v1090_v13  ;;  %v1118_v32 = vrot.slane %v393_v20, %v1073_v6  ;;  %v588_v35 = vrot.slane %v942_v31, %v1071_v5  ;;  %v1124_v36 = vld [vmem:[%s1078_s7 + $0x8] sm:$0xf]  ;;  %v603_v41 = vrot.slane %v563_v30, %v1073_v6 }
  0x17   : > { %v491_v22 = vcombine.high %v936_v19, %v936_v19  ;;  %v498_v23 = vrot.slane %v936_v19, %v1071_v5  ;;  %v513_v29 = vrot.slane %v473_v18, %v1073_v6  ;;  %v442_v33 = vmul.f32 %v435_v21, %v1094_v15  ;;  %v946_v37 = vld.sshfl [vmem:[%s1063_s26 + $0x6] sm:$0x11 pattern:$0x75316420]  ;;  %v1132_v40 = vld [vmem:[%s1083_s10 + $0x8] sm:$0xf] }
  0x18   : > { %v1128_v38 = vrot.slane %v417_v26, %v1073_v6  ;;  %v653_v42 = vrot.slane %v946_v37, %v1071_v5  ;;  %v948_v43 = vld.sshfl [vmem:[%s1069_s29 + $0x6] sm:$0x11 pattern:$0x75316420]  ;;  %v431_v44 = vmul.f32 %v1118_v32, %v1090_v13  ;;  %v615_v47 = vrot.slane %v588_v35, %v1073_v6  ;;  %v1143_v49 = vld [vmem:[%s1078_s7 + $0xc] sm:$0xf] }
  0x19   : > { %v525_v34 = vrot.slane %v498_v23, %v1073_v6  ;;  %v520_v39 = vmul.f32 %v1105_v24, %v513_v29  ;;  %v444_v45 = vsub.f32 %v430_v27, %v442_v33  ;;  %v678_v48 = vrot.slane %v948_v43, %v1071_v5  ;;  %v1147_v51 = vld [vmem:[%s1083_s10 + $0xc] sm:$0xf] }
  0x1a   : > { %v610_v50 = vmul.f32 %v1124_v36, %v603_v41  ;;  %v693_v52 = vrot.slane %v653_v42, %v1073_v6  ;;  %v443_v53 = vmul.f32 %v1128_v38, %v1094_v15  ;;  %v480_v54 = vrot.slane %v466_v17, %v1071_v5 }
  0x1b   : > { %v532_v46 = vmul.f32 %v1112_v28, %v525_v34  ;;  %v622_v56 = vmul.f32 %v1132_v40, %v615_v47  ;;  %v705_v57 = vrot.slane %v678_v48, %v1073_v6  ;;  %v505_v58 = vrot.slane %v491_v22, %v1071_v5 }
  0x1c   : > { %v700_v59 = vmul.f32 %v1143_v49, %v693_v52  ;;  %v445_v60 = vsub.f32 %v431_v44, %v443_v53  ;;  %v517_v61 = vrot.slane %v480_v54, %v1073_v6  ;;  %v570_v4 = vrot.slane %v556_v62, %v1071_v5 }
  0x1d   : > { %v534_v55 = vsub.f32 %v520_v39, %v532_v46  ;;  %v624_v0 = vsub.f32 %v610_v50, %v622_v56  ;;  %v712_v1 = vmul.f32 %v1147_v51, %v705_v57  ;;  %v529_v2 = vrot.slane %v505_v58, %v1073_v6 }
  0x1e   : > { %v521_v3 = vmul.f32 %v1105_v24, %v517_v61  ;;  %v581_v7 = vcombine.high %v942_v31, %v942_v31  ;;  %v646_v8 = vcombine.high %v946_v37, %v946_v37  ;;  %v671_v12 = vcombine.high %v948_v43, %v948_v43 }
  0x1f   : > { %v536_v63 = vadd.f32 %v534_v55, %v444_v45  ;;  %v714_v10 = vsub.f32 %v700_v59, %v712_v1  ;;  %v533_v11 = vmul.f32 %v1112_v28, %v529_v2  ;;  %v607_v17 = vrot.slane %v570_v4, %v1073_v6 }
  0x20   : > { %v595_v14 = vrot.slane %v581_v7, %v1071_v5  ;;  %v660_v18 = vrot.slane %v646_v8, %v1071_v5  ;;  %v448_v19 = vmul.f32 %v1097_v16, %v1094_v15  ;;  %v685_v23 = vrot.slane %v671_v12, %v1071_v5 }
  0x21   : > { %v626_v9 = vadd.f32 %v624_v0, %v536_v63  ;;  %v535_v22 = vsub.f32 %v521_v3, %v533_v11  ;;  %v450_v25 = vmul.f32 %v435_v21, %v1090_v13  ;;  %v611_v26 = vmul.f32 %v1124_v36, %v607_v17 }
  0x22   : > { %v619_v27 = vrot.slane %v595_v14, %v1073_v6  ;;  %v697_v30 = vrot.slane %v660_v18, %v1073_v6  ;;  %v538_v31 = vmul.f32 %v1112_v28, %v513_v29  ;;  %v709_v35 = vrot.slane %v685_v23, %v1073_v6 }
  0x23   : > { %v716_v20 = vadd.f32 %v714_v10, %v626_v9  ;;  %v537_v33 = vadd.f32 %v535_v22, %v445_v60  ;;  %v452_v37 = vadd.f32 %v450_v25, %v448_v19  ;;  %v540_v16 = vmul.f32 %v1105_v24, %v525_v34 }
  0x24   : > { %v623_v39 = vmul.f32 %v1132_v40, %v619_v27  ;;  %v701_v5 = vmul.f32 %v1143_v49, %v697_v30  ;;  %v628_v21 = vmul.f32 %v1132_v40, %v603_v41  ;;  %v630_v42 = vmul.f32 %v1124_v36, %v615_v47 }
  0x25   : > { %726 = vst [vmem:[%s1167_s13] sm:$0xf] %v716_v20  ;;  %v713_v43 = vmul.f32 %v1147_v51, %v709_v35  ;;  %v542_v44 = vadd.f32 %v540_v16, %v538_v31  ;;  %v718_v29 = vmul.f32 %v1147_v51, %v693_v52  ;;  %v720_v45 = vmul.f32 %v1143_v49, %v705_v57 }
  0x26   : > { %v625_v46 = vsub.f32 %v611_v26, %v623_v39  ;;  %v632_v6 = vadd.f32 %v630_v42, %v628_v21  ;;  %v449_v34 = vmul.f32 %v1118_v32, %v1094_v15  ;;  %v451_v48 = vmul.f32 %v1128_v38, %v1090_v13 }
  0x27   : > { %v715_v50 = vsub.f32 %v701_v5, %v713_v43  ;;  %v544_v41 = vadd.f32 %v542_v44, %v452_v37  ;;  %v722_v47 = vadd.f32 %v720_v45, %v718_v29  ;;  %v539_v53 = vmul.f32 %v1112_v28, %v517_v61 }
  0x28   : > { %v627_v54 = vadd.f32 %v625_v46, %v537_v33  ;;  %v453_v55 = vadd.f32 %v451_v48, %v449_v34  ;;  %v541_v52 = vmul.f32 %v1105_v24, %v529_v2  ;;  %v629_v56 = vmul.f32 %v1132_v40, %v607_v17 }
  0x29   : > { %v634_v57 = vadd.f32 %v632_v6, %v544_v41  ;;  %v631_v58 = vmul.f32 %v1124_v36, %v619_v27  ;;  %v719_v15 = vmul.f32 %v1147_v51, %v697_v30  ;;  %v721_v32 = vmul.f32 %v1143_v49, %v709_v35 }
  0x2a   : > { %v717_v13 = vadd.f32 %v715_v50, %v627_v54  ;;  %v543_v38 = vadd.f32 %v541_v52, %v539_v53 }
  0x2b   : > { %v724_v28 = vadd.f32 %v722_v47, %v634_v57  ;;  %v633_v59 = vadd.f32 %v631_v58, %v629_v56  ;;  %v723_v24 = vadd.f32 %v721_v32, %v719_v15 }
  0x2c   : > { %727 = vst [vmem:[%s1167_s13 + $0x4] sm:$0xf] %v717_v13  ;;  %v545_v60 = vadd.f32 %v543_v38, %v453_v55 }
  0x2d   : > { %728 = vst [vmem:[%s369_s16] sm:$0xf] %v724_v28 }
  0x2e   : > { %v635_v40 = vadd.f32 %v633_v59, %v545_v60 }
  0x30   : > { %v725_v61 = vadd.f32 %v723_v24, %v635_v40 }
  0x32   : > { %729 = vst [vmem:[%s369_s16 + $0x4] sm:$0xf] %v725_v61 }
  0x33 PF: > { %s16_s20 = sadd.s32 1, %s1006_s20   ;;  %s1220_s18 = smov %s1002_s19 }
  0x34   : > { %p13_p5 = scmp.ge.s32.totalorder %s16_s20, 4   ;;  %s1221_s19 = smov %s1223_s21 }
  0x36   :  { %15 = sbr.rel (!%p13_p5) target bundleno = 2 (0x2), region = 99 }

// kernel: fwd.3
= control target key start
LH: loop header
LB: loop body
LE: loop exit
PB: predicated region body
PF: predicated region fallthrough
CT: control target
= control target key end

     0   :  { %s509_s12 = smov 0   ;;  %s511_s13 = smov 0   ;;  %s555_s0 = inlined_call_operand.vmem [shape: f32[2,4,256], index: 0, kind: input, shape index: {}]   ;;  %s556_s1 = inlined_call_operand.vmem [shape: f32[4,4], index: 1, kind: input, shape index: {}]   ;;  %s557_s2 = inlined_call_operand.vmem [shape: f32[4,1], index: 2, kind: input, shape index: {}]   ;;  %s558_s3 = inlined_call_operand.vmem [shape: f32[2,4,256], index: 3, kind: output, shape index: {}]  }
   0x1   :  { %s513_s14 = smov 0  }
   0x2 LB: > { %s25_s15 = sadd.s32 1, %s479_s13  ;;  %p420_p0 = scmp.ge.s32.totalorder %s483_s14, 1  ;;  %s483_s14 = sphi %s513_s14, %s13_s14   ;;  %s479_s13 = sphi %s511_s13, %s560_s13   ;;  %s475_s12 = sphi %s509_s12, %s559_s12  }
   0x3   : > { %p27_p1 = scmp.ge.s32.totalorder %s25_s15, 2  ;;  %p158_p2 = scmp.lt.s32.totalorder %s483_s14, 3 }
   0x5   : > { %s562_s15 = smov (%p27_p1, %s25_s15), 0  ;;  %p159_p3 = pnand %p420_p0, %p158_p2 }
   0x6   : > { %v211_v0 = vld [vmem:[%s556_s1] sm:$0xf] (!%p159_p3)  ;;  %v485_v1 = vmov (!%p159_p3), 0   ;;  %v486_v2 = vmov (!%p159_p3), 1   ;;  %v487_v4 = vmov (!%p159_p3), 2   ;;  %v488_v5 = vmov (!%p159_p3), 3  }
   0x7   : > { %162 = sbr.rel (%p159_p3) target bundleno = 152 (0x98), region = 32  ;;  %457 = vset.pattern.permute.xlu0 (!%p159_p3), %v485_v1  ;;  %458 = vset.pattern.permute.xlu1 (!%p159_p3), %v486_v2  ;;  %v212_v3 = vld [vmem:[%s557_s2] sm:$0xf] (!%p159_p3)  ;;  %p191_p4 = scmp.lt.s32.totalorder (!%p159_p3), %s475_s12, 1  ;;  %v224_v6 = vlaneseq (!%p159_p3) }
   0x8   : > { %220 = vperm.xlu0 (!%p159_p3), %457, %v211_v0   ;;  %247 = vperm.xlu1 (!%p159_p3), %458, %v211_v0  }
   0x9   : > { %v225_v7 = vshrl.u32 (!%p159_p3), %v224_v6, 7 }
   0xb   : > { %v226_v8 = vsub.s32 (!%p159_p3), 0, %v225_v7  ;;  %v230_v9 = vsub.s32 (!%p159_p3), 4, %v225_v7  ;;  %v252_v11 = vsub.s32 (!%p159_p3), 1, %v225_v7  ;;  %v256_v12 = vsub.s32 (!%p159_p3), 5, %v225_v7 }
   0xc   : > { %215 = vperm.xlu0 (!%p159_p3), %457, %v212_v3   ;;  %459 = vset.pattern.permute.xlu1 (!%p159_p3), %v487_v4  ;;  %v278_v13 = vsub.s32 (!%p159_p3), 2, %v225_v7  ;;  %v282_v14 = vsub.s32 (!%p159_p3), 6, %v225_v7  ;;  %v304_v21 = vsub.s32 (!%p159_p3), 3, %v225_v7  ;;  %v308_v22 = vsub.s32 (!%p159_p3), 7, %v225_v7 }
   0xd   : > { %273 = vperm.xlu1 (!%p159_p3), %459, %v211_v0  }
   0xe   : > { %s564_s12 = smov (!%p191_p4, %s475_s12), 1 }
   0xf   : > { %s427_s20 = sshll.u32 %s564_s12, 3 }
  0x10   : > { %460 = vset.pattern.permute.xlu0 %v488_v5  ;;  %s198_s23 = scalar_lea.vmem %s555_s0, %s427_s20  ;;  %s208_s26 = scalar_lea.vmem %s558_s3, %s427_s20 }
  0x11   : > { %299 = vperm.xlu0 %460, %v211_v0   ;;  %v210_v10 = vld [vmem:[%s198_s23] sm:$0xff] }
  0x12   : > { %v227_v15 = vrot.slane %v210_v10, %v226_v8  ;;  %v231_v16 = vrot.slane %v210_v10, %v230_v9  ;;  %v253_v17 = vrot.slane %v210_v10, %v252_v11  ;;  %v257_v18 = vrot.slane %v210_v10, %v256_v12 }
  0x13   : > { %v279_v19 = vrot.slane %v210_v10, %v278_v13  ;;  %v283_v20 = vrot.slane %v210_v10, %v282_v14  ;;  %v305_v31 = vrot.slane %v210_v10, %v304_v21  ;;  %v309_v32 = vrot.slane %v210_v10, %v308_v22 }
  0x14   : > { %v237_v23 = vrot.slane %v227_v15, %v226_v8  ;;  %v241_v24 = vrot.slane %v231_v16, %v226_v8  ;;  %v263_v27 = vrot.slane %v253_v17, %v252_v11  ;;  %v267_v28 = vrot.slane %v257_v18, %v252_v11 }
  0x15   : > { %v289_v29 = vrot.slane %v279_v19, %v278_v13  ;;  %v293_v30 = vrot.slane %v283_v20, %v278_v13  ;;  %v315_v43 = vrot.slane %v305_v31, %v304_v21  ;;  %v319_v44 = vrot.slane %v309_v32, %v304_v21 }
  0x87   : > { %v221_v25 = vpop.permute.xlu0 %220  ;;  %v248_v26 = vpop.permute.xlu1 %247 }
  0x88   : > { %v242_v33 = vmul.f32 %v237_v23, %v221_v25  ;;  %v243_v34 = vmul.f32 %v241_v24, %v221_v25  ;;  %v268_v36 = vmul.f32 %v263_v27, %v248_v26  ;;  %v269_v37 = vmul.f32 %v267_v28, %v248_v26 }
  0x8b   : > { %v216_v35 = vpop.permute.xlu0 %215 }
  0x8c   : > { %v244_v38 = vadd.f32 %v242_v33, %v216_v35  ;;  %v245_v39 = vadd.f32 %v243_v34, %v216_v35  ;;  %v274_v40 = vpop.permute.xlu1 %273 }
  0x8d   : > { %v294_v41 = vmul.f32 %v289_v29, %v274_v40  ;;  %v295_v42 = vmul.f32 %v293_v30, %v274_v40 }
  0x8e   : > { %v270_v45 = vadd.f32 %v268_v36, %v244_v38  ;;  %v271_v46 = vadd.f32 %v269_v37, %v245_v39 }
  0x90   : > { %v296_v47 = vadd.f32 %v294_v41, %v270_v45  ;;  %v297_v48 = vadd.f32 %v295_v42, %v271_v46  ;;  %v300_v49 = vpop.permute.xlu0 %299 }
  0x91   : > { %v320_v50 = vmul.f32 %v315_v43, %v300_v49  ;;  %v321_v51 = vmul.f32 %v319_v44, %v300_v49 }
  0x93   : > { %v322_v52 = vadd.f32 %v320_v50, %v296_v47  ;;  %v323_v53 = vadd.f32 %v321_v51, %v297_v48 }
  0x95   : > { %v326_v54 = vcombine.low %v322_v52, %v323_v53 }
  0x97   : > { %328 = vst [vmem:[%s208_s26] sm:$0xff] %v326_v54 }
  0x98 PF: > { %s13_s14 = sadd.s32 1, %s483_s14   ;;  %s559_s12 = smov %s479_s13 }
  0x99   : > { %p10_p5 = scmp.ge.s32.totalorder %s13_s14, 4   ;;  %s560_s13 = smov %s562_s15 }
  0x9b   :  { %12 = sbr.rel (!%p10_p5) target bundleno = 2 (0x2), region = 62 }

</bundles_post_ra>
